<compile_context>
chip_gen: v7x
topology: tpu7x:2x2x1
jax: 0.10.0
libtpu: 0.0.40
codegen_flags: <defaults>
</compile_context>

<pallas_src>
import math
import functools

import jax
import jax.numpy as jnp
from jax.experimental import pallas as pl
from jax.experimental.pallas import tpu as pltpu

# scaled-down hyper-params (PyTorch defaults: dm=128, num_heads=8, ff_dim=512)
DM = 32
NUM_HEADS = 4
FF_DIM = 64
BN_EPS = 1e-5
LANE = 128          # TPU vreg lane width; activations / weight slabs padded to this


# ----------------------------- in-kernel helpers -----------------------------

def _batch_norm(x, gamma, beta):
    """BatchNorm1d training-mode semantics: per-channel stats over all B*S rows.
    Padded (zero) channels have mean=var=0 and gamma=beta=0, so they stay zero."""
    mean = jnp.mean(x, axis=0, keepdims=True)
    var = jnp.mean((x - mean) ** 2, axis=0, keepdims=True)   # biased variance (training BN)
    return (x - mean) * jax.lax.rsqrt(var + BN_EPS) * gamma + beta


def _softmax_lastdim(s):
    m = jnp.max(s, axis=-1, keepdims=True)
    e = jnp.exp(s - m)
    # reciprocal on the EUP slot (free relative to a VALU divide)
    return e * pl.reciprocal(jnp.sum(e, axis=-1, keepdims=True), approx=True)


# ----------------------------- fused EncoderLayer kernel -----------------------------

def _encoder_layer_kernel(x_ref, w_ref, vec_ref, o_ref, *, bsz, seq, dm, num_heads):
    P = LANE
    head_dim = dm // num_heads
    inv_scale = 1.0 / math.sqrt(head_dim)
    rows = bsz * seq

    x = x_ref[...]                       # (B*S, 128); channels >= dm are zero
    vec = vec_ref[...]                   # (8, 128) packed bias / BN parameters
    b_qkv, b_o = vec[0:1, :], vec[1:2, :]
    bn1_g, bn1_b = vec[2:3, :], vec[3:4, :]
    b_f1, b_f2 = vec[4:5, :], vec[5:6, :]
    bn2_g, bn2_b = vec[6:7, :], vec[7:8, :]

    # ---- fused, lane-dense Q/K/V projection: one (128,128) weight window ----
    # output columns: [0:dm]=Q, [dm:2dm]=K, [2dm:3dm]=V, rest zero
    qkv = jnp.dot(x, w_ref[:, 0:P], preferred_element_type=jnp.float32) + b_qkv

    # ---- per-head attention with lin_o FOLDED IN:  u = sum_h (softmax(QhKh^T/√Dh)Vh) @ Wo[h·Dh:(h+1)·Dh,:]
    # No lane-dim concat of heads; Wo row-slices are 8-aligned sublane slices.
    ctx_o = None
    for h in range(num_heads):
        q_lo = h * head_dim
        k_lo = dm + h * head_dim
        v_lo = 2 * dm + h * head_dim
        qh = qkv[:, q_lo:q_lo + head_dim].reshape(bsz, seq, head_dim)
        kh = qkv[:, k_lo:k_lo + head_dim].reshape(bsz, seq, head_dim)
        vh = qkv[:, v_lo:v_lo + head_dim].reshape(bsz, seq, head_dim)
        s = jnp.einsum('bqd,bkd->bqk', qh, kh,
                       preferred_element_type=jnp.float32) * inv_scale       # (B, S, S)
        p = _softmax_lastdim(s)
        ctx_h = jnp.einsum('bqk,bkd->bqd', p, vh,
                           preferred_element_type=jnp.float32)               # (B, S, Dh)
        ctx_h = ctx_h.reshape(rows, head_dim)
        part = jnp.dot(ctx_h, w_ref[q_lo:q_lo + head_dim, P:2 * P],
                       preferred_element_type=jnp.float32)                   # (B*S, 128)
        ctx_o = part if ctx_o is None else ctx_o + part
    # TODO(synk): at production dm/S, restructure heads onto a grid/batch axis with
    # >=128-wide contraction tiles instead of 8-lane slices (flash-style).

    # ---- output projection bias + residual + BN1 ----
    h1 = _batch_norm(ctx_o + b_o + x, bn1_g, bn1_b)

    # ---- feed-forward (FF1 + ReLU + FF2) + residual + BN2, all 128-lane dense ----
    f = jnp.maximum(jnp.dot(h1, w_ref[:, 2 * P:3 * P],
                            preferred_element_type=jnp.float32) + b_f1, 0.0)
    f = jnp.dot(f, w_ref[:, 3 * P:4 * P], preferred_element_type=jnp.float32) + b_f2
    o_ref[...] = _batch_norm(f + h1, bn2_g, bn2_b)   # full (B*S, 128) unmasked store


# ----------------------------- wrapper -----------------------------

def encoder_layer_forward(x, packed, *, dm=DM, num_heads=NUM_HEADS, ff_dim=FF_DIM):
    """EncoderLayer.forward: x (B, S, dm) -> (B, S, dm), one fused pallas_call."""
    B, S, _dm = x.shape
    assert _dm == dm and dm % num_heads == 0
    assert 3 * dm <= LANE and ff_dim <= LANE, "toy-size packing assumes widths <= 128"
    M = B * S
    assert M % 8 == 0

    x_pad = jnp.pad(x.reshape(M, dm), ((0, 0), (0, LANE - dm)))   # lane-dense activation slab

    w_pack, vec_pack = packed['w_pack'], packed['vec_pack']
    head_dim = dm // num_heads

    # advisory cost estimate so XLA can overlap the custom call with neighbours
    flops = (2 * M * LANE * LANE * 3                      # qkv, ff1, ff2 (padded 128x128)
             + 2 * M * dm * LANE                          # lin_o folded into head loop
             + 4 * B * num_heads * S * S * head_dim)      # attention einsums
    transcendentals = B * num_heads * S * S + 2 * M       # softmax exp + BN rsqrt / recips
    bytes_accessed = 4 * (x_pad.size + w_pack.size + vec_pack.size + M * LANE)

    out = pl.pallas_call(
        functools.partial(_encoder_layer_kernel, bsz=B, seq=S, dm=dm, num_heads=num_heads),
        out_shape=jax.ShapeDtypeStruct((M, LANE), jnp.float32),
        grid=(1,),                       # whole layer is one VMEM-resident block at this size
        in_specs=[
            pl.BlockSpec((M, LANE), lambda i: (0, 0)),          # activations
            pl.BlockSpec((LANE, 4 * LANE), lambda i: (0, 0)),   # packed weights (constant map)
            pl.BlockSpec((8, LANE), lambda i: (0, 0)),          # packed biases / BN params
        ],
        out_specs=pl.BlockSpec((M, LANE), lambda i: (0, 0)),
        compiler_params=pltpu.CompilerParams(dimension_semantics=("arbitrary",)),
        cost_estimate=pl.CostEstimate(flops=flops,
                                      transcendentals=transcendentals,
                                      bytes_accessed=bytes_accessed),
    )(x_pad, w_pack, vec_pack)
    return out[:, :dm].reshape(B, S, dm)


# ----------------------------- parameter init + packing -----------------------------

def _lin_init(key, din, dout):
    k1, k2 = jax.random.split(key)
    lim = 1.0 / math.sqrt(din)
    w = jax.random.uniform(k1, (din, dout), jnp.float32, -lim, lim)
    b = jax.random.uniform(k2, (dout,), jnp.float32, -lim, lim)
    return w, b


def init_params(key, dm=DM, ff_dim=FF_DIM):
    keys = jax.random.split(key, 6)
    wq, bq = _lin_init(keys[0], dm, dm)
    wk, bk = _lin_init(keys[1], dm, dm)
    wv, bv = _lin_init(keys[2], dm, dm)
    wo, bo = _lin_init(keys[3], dm, dm)
    wf1, bf1 = _lin_init(keys[4], dm, ff_dim)
    wf2, bf2 = _lin_init(keys[5], ff_dim, dm)
    return {
        'w_q': wq, 'b_q': bq, 'w_k': wk, 'b_k': bk, 'w_v': wv, 'b_v': bv,
        'w_o': wo, 'b_o': bo,
        'w_f1': wf1, 'b_f1': bf1, 'w_f2': wf2, 'b_f2': bf2,
        'bn1_g': jnp.ones((dm,), jnp.float32), 'bn1_b': jnp.zeros((dm,), jnp.float32),
        'bn2_g': jnp.ones((dm,), jnp.float32), 'bn2_b': jnp.zeros((dm,), jnp.float32),
    }


def _pad2(a, rows, cols):
    r, c = a.shape
    return jnp.pad(a, ((0, rows - r), (0, cols - c)))


def _pad_row(v, cols=LANE):
    return jnp.pad(v, (0, cols - v.shape[0])).reshape(1, cols)


def pack_params(p):
    """Pack all weights into one (128, 512) slab and all vectors into one (8, 128) block."""
    w_qkv = jnp.concatenate([p['w_q'], p['w_k'], p['w_v']], axis=1)     # (dm, 3dm), cols [Q|K|V]
    b_qkv = jnp.concatenate([p['b_q'], p['b_k'], p['b_v']], axis=0)
    w_pack = jnp.concatenate([
        _pad2(w_qkv, LANE, LANE),        # [:,   0:128] fused QKV
        _pad2(p['w_o'], LANE, LANE),     # [:, 128:256] output projection
        _pad2(p['w_f1'], LANE, LANE),    # [:, 256:384] FF1
        _pad2(p['w_f2'], LANE, LANE),    # [:, 384:512] FF2
    ], axis=1)
    vec_pack = jnp.concatenate([
        _pad_row(b_qkv), _pad_row(p['b_o']),
        _pad_row(p['bn1_g']), _pad_row(p['bn1_b']),
        _pad_row(p['b_f1']), _pad_row(p['b_f2']),
        _pad_row(p['bn2_g']), _pad_row(p['bn2_b']),
    ], axis=0)                                                          # (8, 128)
    return {'w_pack': w_pack, 'vec_pack': vec_pack}


# TODO(synk): only attention_type='standard' is implemented; nystrom / linformer /
# performer branches and BatchNorm running-statistics (eval-mode) tracking are not.

if __name__ == "__main__":
    key = jax.random.PRNGKey(0)
    pkey, xkey = jax.random.split(key)
    params = init_params(pkey)
    packed = pack_params(params)

    B, S = 2, 8                                     # batch=2, gr_size=8, dm=32, heads=4
    x = jax.random.normal(xkey, (B, S, DM), jnp.float32)

    fwd = jax.jit(functools.partial(encoder_layer_forward,
                                    dm=DM, num_heads=NUM_HEADS, ff_dim=FF_DIM))
    y = fwd(x, packed)
    jax.block_until_ready(y)
    print("KERNEL_OK")
</pallas_src>

<mosaic_0001>
module attributes {stable_mosaic.version = 11 : i64} {
  func.func @_encoder_layer_kernel(%arg0: i32, %arg1: memref<16x128xf32, #tpu.memory_space<vmem>>, %arg2: memref<128x512xf32, #tpu.memory_space<vmem>>, %arg3: memref<8x128xf32, #tpu.memory_space<vmem>>, %arg4: memref<16x128xf32, #tpu.memory_space<vmem>>) attributes {dimension_semantics = [#tpu.dimension_semantics<arbitrary>], iteration_bounds = array<i64: 1>, scalar_prefetch = 0 : i64, scratch_operands = 0 : i64, tpu.core_type = #tpu.core_type<tc>, window_params = [{pipeline_mode = #tpu.pipeline_mode<synchronous>, transform_indices = @transform_0, window_bounds = array<i64: 16, 128>}, {pipeline_mode = #tpu.pipeline_mode<synchronous>, transform_indices = @transform_1, window_bounds = array<i64: 128, 512>}, {pipeline_mode = #tpu.pipeline_mode<synchronous>, transform_indices = @transform_2, window_bounds = array<i64: 8, 128>}, {pipeline_mode = #tpu.pipeline_mode<synchronous>, transform_indices = @transform_3, window_bounds = array<i64: 16, 128>}]} {
    %c0 = arith.constant 0 : index
    %c0_0 = arith.constant 0 : index
    %0 = vector.load %arg1[%c0, %c0_0] : memref<16x128xf32, #tpu.memory_space<vmem>>, vector<16x128xf32>
    %c0_1 = arith.constant 0 : index
    %c0_2 = arith.constant 0 : index
    %1 = vector.load %arg3[%c0_1, %c0_2] : memref<8x128xf32, #tpu.memory_space<vmem>>, vector<8x128xf32>
    %2 = vector.extract_strided_slice %1 {offsets = [0, 0], sizes = [1, 128], strides = [1, 1]} : vector<8x128xf32> to vector<1x128xf32>
    %3 = vector.extract_strided_slice %1 {offsets = [1, 0], sizes = [1, 128], strides = [1, 1]} : vector<8x128xf32> to vector<1x128xf32>
    %4 = vector.extract_strided_slice %1 {offsets = [2, 0], sizes = [1, 128], strides = [1, 1]} : vector<8x128xf32> to vector<1x128xf32>
    %5 = vector.extract_strided_slice %1 {offsets = [3, 0], sizes = [1, 128], strides = [1, 1]} : vector<8x128xf32> to vector<1x128xf32>
    %6 = vector.extract_strided_slice %1 {offsets = [4, 0], sizes = [1, 128], strides = [1, 1]} : vector<8x128xf32> to vector<1x128xf32>
    %7 = vector.extract_strided_slice %1 {offsets = [5, 0], sizes = [1, 128], strides = [1, 1]} : vector<8x128xf32> to vector<1x128xf32>
    %8 = vector.extract_strided_slice %1 {offsets = [6, 0], sizes = [1, 128], strides = [1, 1]} : vector<8x128xf32> to vector<1x128xf32>
    %9 = vector.extract_strided_slice %1 {offsets = [7, 0], sizes = [1, 128], strides = [1, 1]} : vector<8x128xf32> to vector<1x128xf32>
    %c0_3 = arith.constant 0 : index
    %c0_4 = arith.constant 0 : index
    %10 = vector.load %arg2[%c0_3, %c0_4] : memref<128x512xf32, #tpu.memory_space<vmem>>, vector<128x128xf32>
    %cst = arith.constant dense<0.000000e+00> : vector<16x128xf32>
    %11 = tpu.matmul %0, %10, %cst {dimension_numbers = #tpu.dot_dimension_numbers<[1], [0], [0], [1], [0, 0, 1, 1], [], []>} : vector<16x128xf32>, vector<128x128xf32>, vector<16x128xf32> -> vector<16x128xf32>
    %12 = vector.broadcast %2 : vector<1x128xf32> to vector<16x128xf32>
    %13 = arith.addf %11, %12 : vector<16x128xf32>
    %14 = vector.extract_strided_slice %13 {offsets = [0, 0], sizes = [16, 8], strides = [1, 1]} : vector<16x128xf32> to vector<16x8xf32>
    %15 = vector.shape_cast %14 : vector<16x8xf32> to vector<2x8x8xf32>
    %16 = vector.extract_strided_slice %13 {offsets = [0, 32], sizes = [16, 8], strides = [1, 1]} : vector<16x128xf32> to vector<16x8xf32>
    %17 = vector.shape_cast %16 : vector<16x8xf32> to vector<2x8x8xf32>
    %18 = vector.extract_strided_slice %13 {offsets = [0, 64], sizes = [16, 8], strides = [1, 1]} : vector<16x128xf32> to vector<16x8xf32>
    %19 = vector.shape_cast %18 : vector<16x8xf32> to vector<2x8x8xf32>
    "tpu.trace_start"() <{level = 10 : i32, message = "bqd,bkd->bqk"}> : () -> ()
    %cst_5 = arith.constant dense<0.000000e+00> : vector<2x8x8xf32>
    %20 = tpu.matmul %15, %17, %cst_5 {dimension_numbers = #tpu.dot_dimension_numbers<[2], [2], [1], [1], [0, 0, 0, 1, 1, 1], [0], [0]>} : vector<2x8x8xf32>, vector<2x8x8xf32>, vector<2x8x8xf32> -> vector<2x8x8xf32>
    "tpu.trace_stop"() : () -> ()
    %cst_6 = arith.constant 0.353553385 : f32
    %21 = vector.broadcast %cst_6 : f32 to vector<2x8x8xf32>
    %22 = arith.mulf %20, %21 : vector<2x8x8xf32>
    %cst_7 = arith.constant dense<0xFF800000> : vector<2x8xf32>
    %23 = vector.multi_reduction <maximumf>, %22, %cst_7 [2] : vector<2x8x8xf32> to vector<2x8xf32>
    %24 = vector.shape_cast %23 : vector<2x8xf32> to vector<2x8x1xf32>
    %25 = vector.broadcast %24 : vector<2x8x1xf32> to vector<2x8x8xf32>
    %26 = arith.subf %22, %25 : vector<2x8x8xf32>
    %27 = math.exp %26 : vector<2x8x8xf32>
    %cst_8 = arith.constant dense<0.000000e+00> : vector<2x8xf32>
    %28 = vector.multi_reduction <add>, %27, %cst_8 [2] : vector<2x8x8xf32> to vector<2x8xf32>
    %29 = vector.shape_cast %28 : vector<2x8xf32> to vector<2x8x1xf32>
    %30 = tpu.reciprocal %29 {approx = true} : vector<2x8x1xf32> -> vector<2x8x1xf32>
    %31 = vector.broadcast %30 : vector<2x8x1xf32> to vector<2x8x8xf32>
    %32 = arith.mulf %27, %31 : vector<2x8x8xf32>
    "tpu.trace_start"() <{level = 10 : i32, message = "bqk,bkd->bqd"}> : () -> ()
    %cst_9 = arith.constant dense<0.000000e+00> : vector<2x8x8xf32>
    %33 = tpu.matmul %32, %19, %cst_9 {dimension_numbers = #tpu.dot_dimension_numbers<[2], [1], [1], [2], [0, 0, 0, 1, 1, 2], [0], [0]>} : vector<2x8x8xf32>, vector<2x8x8xf32>, vector<2x8x8xf32> -> vector<2x8x8xf32>
    "tpu.trace_stop"() : () -> ()
    %34 = vector.shape_cast %33 : vector<2x8x8xf32> to vector<16x8xf32>
    %c0_10 = arith.constant 0 : index
    %c128 = arith.constant 128 : index
    %35 = vector.load %arg2[%c0_10, %c128] : memref<128x512xf32, #tpu.memory_space<vmem>>, vector<8x128xf32>
    %cst_11 = arith.constant dense<0.000000e+00> : vector<16x128xf32>
    %36 = tpu.matmul %34, %35, %cst_11 {dimension_numbers = #tpu.dot_dimension_numbers<[1], [0], [0], [1], [0, 0, 1, 1], [], []>} : vector<16x8xf32>, vector<8x128xf32>, vector<16x128xf32> -> vector<16x128xf32>
    %37 = vector.extract_strided_slice %13 {offsets = [0, 8], sizes = [16, 8], strides = [1, 1]} : vector<16x128xf32> to vector<16x8xf32>
    %38 = vector.shape_cast %37 : vector<16x8xf32> to vector<2x8x8xf32>
    %39 = vector.extract_strided_slice %13 {offsets = [0, 40], sizes = [16, 8], strides = [1, 1]} : vector<16x128xf32> to vector<16x8xf32>
    %40 = vector.shape_cast %39 : vector<16x8xf32> to vector<2x8x8xf32>
    %41 = vector.extract_strided_slice %13 {offsets = [0, 72], sizes = [16, 8], strides = [1, 1]} : vector<16x128xf32> to vector<16x8xf32>
    %42 = vector.shape_cast %41 : vector<16x8xf32> to vector<2x8x8xf32>
    "tpu.trace_start"() <{level = 10 : i32, message = "bqd,bkd->bqk"}> : () -> ()
    %cst_12 = arith.constant dense<0.000000e+00> : vector<2x8x8xf32>
    %43 = tpu.matmul %38, %40, %cst_12 {dimension_numbers = #tpu.dot_dimension_numbers<[2], [2], [1], [1], [0, 0, 0, 1, 1, 1], [0], [0]>} : vector<2x8x8xf32>, vector<2x8x8xf32>, vector<2x8x8xf32> -> vector<2x8x8xf32>
    "tpu.trace_stop"() : () -> ()
    %cst_13 = arith.constant 0.353553385 : f32
    %44 = vector.broadcast %cst_13 : f32 to vector<2x8x8xf32>
    %45 = arith.mulf %43, %44 : vector<2x8x8xf32>
    %cst_14 = arith.constant dense<0xFF800000> : vector<2x8xf32>
    %46 = vector.multi_reduction <maximumf>, %45, %cst_14 [2] : vector<2x8x8xf32> to vector<2x8xf32>
    %47 = vector.shape_cast %46 : vector<2x8xf32> to vector<2x8x1xf32>
    %48 = vector.broadcast %47 : vector<2x8x1xf32> to vector<2x8x8xf32>
    %49 = arith.subf %45, %48 : vector<2x8x8xf32>
    %50 = math.exp %49 : vector<2x8x8xf32>
    %cst_15 = arith.constant dense<0.000000e+00> : vector<2x8xf32>
    %51 = vector.multi_reduction <add>, %50, %cst_15 [2] : vector<2x8x8xf32> to vector<2x8xf32>
    %52 = vector.shape_cast %51 : vector<2x8xf32> to vector<2x8x1xf32>
    %53 = tpu.reciprocal %52 {approx = true} : vector<2x8x1xf32> -> vector<2x8x1xf32>
    %54 = vector.broadcast %53 : vector<2x8x1xf32> to vector<2x8x8xf32>
    %55 = arith.mulf %50, %54 : vector<2x8x8xf32>
    "tpu.trace_start"() <{level = 10 : i32, message = "bqk,bkd->bqd"}> : () -> ()
    %cst_16 = arith.constant dense<0.000000e+00> : vector<2x8x8xf32>
    %56 = tpu.matmul %55, %42, %cst_16 {dimension_numbers = #tpu.dot_dimension_numbers<[2], [1], [1], [2], [0, 0, 0, 1, 1, 2], [0], [0]>} : vector<2x8x8xf32>, vector<2x8x8xf32>, vector<2x8x8xf32> -> vector<2x8x8xf32>
    "tpu.trace_stop"() : () -> ()
    %57 = vector.shape_cast %56 : vector<2x8x8xf32> to vector<16x8xf32>
    %c8 = arith.constant 8 : index
    %c128_17 = arith.constant 128 : index
    %58 = vector.load %arg2[%c8, %c128_17] : memref<128x512xf32, #tpu.memory_space<vmem>>, vector<8x128xf32>
    %cst_18 = arith.constant dense<0.000000e+00> : vector<16x128xf32>
    %59 = tpu.matmul %57, %58, %cst_18 {dimension_numbers = #tpu.dot_dimension_numbers<[1], [0], [0], [1], [0, 0, 1, 1], [], []>} : vector<16x8xf32>, vector<8x128xf32>, vector<16x128xf32> -> vector<16x128xf32>
    %60 = arith.addf %36, %59 : vector<16x128xf32>
    %61 = vector.extract_strided_slice %13 {offsets = [0, 16], sizes = [16, 8], strides = [1, 1]} : vector<16x128xf32> to vector<16x8xf32>
    %62 = vector.shape_cast %61 : vector<16x8xf32> to vector<2x8x8xf32>
    %63 = vector.extract_strided_slice %13 {offsets = [0, 48], sizes = [16, 8], strides = [1, 1]} : vector<16x128xf32> to vector<16x8xf32>
    %64 = vector.shape_cast %63 : vector<16x8xf32> to vector<2x8x8xf32>
    %65 = vector.extract_strided_slice %13 {offsets = [0, 80], sizes = [16, 8], strides = [1, 1]} : vector<16x128xf32> to vector<16x8xf32>
    %66 = vector.shape_cast %65 : vector<16x8xf32> to vector<2x8x8xf32>
    "tpu.trace_start"() <{level = 10 : i32, message = "bqd,bkd->bqk"}> : () -> ()
    %cst_19 = arith.constant dense<0.000000e+00> : vector<2x8x8xf32>
    %67 = tpu.matmul %62, %64, %cst_19 {dimension_numbers = #tpu.dot_dimension_numbers<[2], [2], [1], [1], [0, 0, 0, 1, 1, 1], [0], [0]>} : vector<2x8x8xf32>, vector<2x8x8xf32>, vector<2x8x8xf32> -> vector<2x8x8xf32>
    "tpu.trace_stop"() : () -> ()
    %cst_20 = arith.constant 0.353553385 : f32
    %68 = vector.broadcast %cst_20 : f32 to vector<2x8x8xf32>
    %69 = arith.mulf %67, %68 : vector<2x8x8xf32>
    %cst_21 = arith.constant dense<0xFF800000> : vector<2x8xf32>
    %70 = vector.multi_reduction <maximumf>, %69, %cst_21 [2] : vector<2x8x8xf32> to vector<2x8xf32>
    %71 = vector.shape_cast %70 : vector<2x8xf32> to vector<2x8x1xf32>
    %72 = vector.broadcast %71 : vector<2x8x1xf32> to vector<2x8x8xf32>
    %73 = arith.subf %69, %72 : vector<2x8x8xf32>
    %74 = math.exp %73 : vector<2x8x8xf32>
    %cst_22 = arith.constant dense<0.000000e+00> : vector<2x8xf32>
    %75 = vector.multi_reduction <add>, %74, %cst_22 [2] : vector<2x8x8xf32> to vector<2x8xf32>
    %76 = vector.shape_cast %75 : vector<2x8xf32> to vector<2x8x1xf32>
    %77 = tpu.reciprocal %76 {approx = true} : vector<2x8x1xf32> -> vector<2x8x1xf32>
    %78 = vector.broadcast %77 : vector<2x8x1xf32> to vector<2x8x8xf32>
    %79 = arith.mulf %74, %78 : vector<2x8x8xf32>
    "tpu.trace_start"() <{level = 10 : i32, message = "bqk,bkd->bqd"}> : () -> ()
    %cst_23 = arith.constant dense<0.000000e+00> : vector<2x8x8xf32>
    %80 = tpu.matmul %79, %66, %cst_23 {dimension_numbers = #tpu.dot_dimension_numbers<[2], [1], [1], [2], [0, 0, 0, 1, 1, 2], [0], [0]>} : vector<2x8x8xf32>, vector<2x8x8xf32>, vector<2x8x8xf32> -> vector<2x8x8xf32>
    "tpu.trace_stop"() : () -> ()
    %81 = vector.shape_cast %80 : vector<2x8x8xf32> to vector<16x8xf32>
    %c16 = arith.constant 16 : index
    %c128_24 = arith.constant 128 : index
    %82 = vector.load %arg2[%c16, %c128_24] : memref<128x512xf32, #tpu.memory_space<vmem>>, vector<8x128xf32>
    %cst_25 = arith.constant dense<0.000000e+00> : vector<16x128xf32>
    %83 = tpu.matmul %81, %82, %cst_25 {dimension_numbers = #tpu.dot_dimension_numbers<[1], [0], [0], [1], [0, 0, 1, 1], [], []>} : vector<16x8xf32>, vector<8x128xf32>, vector<16x128xf32> -> vector<16x128xf32>
    %84 = arith.addf %60, %83 : vector<16x128xf32>
    %85 = vector.extract_strided_slice %13 {offsets = [0, 24], sizes = [16, 8], strides = [1, 1]} : vector<16x128xf32> to vector<16x8xf32>
    %86 = vector.shape_cast %85 : vector<16x8xf32> to vector<2x8x8xf32>
    %87 = vector.extract_strided_slice %13 {offsets = [0, 56], sizes = [16, 8], strides = [1, 1]} : vector<16x128xf32> to vector<16x8xf32>
    %88 = vector.shape_cast %87 : vector<16x8xf32> to vector<2x8x8xf32>
    %89 = vector.extract_strided_slice %13 {offsets = [0, 88], sizes = [16, 8], strides = [1, 1]} : vector<16x128xf32> to vector<16x8xf32>
    %90 = vector.shape_cast %89 : vector<16x8xf32> to vector<2x8x8xf32>
    "tpu.trace_start"() <{level = 10 : i32, message = "bqd,bkd->bqk"}> : () -> ()
    %cst_26 = arith.constant dense<0.000000e+00> : vector<2x8x8xf32>
    %91 = tpu.matmul %86, %88, %cst_26 {dimension_numbers = #tpu.dot_dimension_numbers<[2], [2], [1], [1], [0, 0, 0, 1, 1, 1], [0], [0]>} : vector<2x8x8xf32>, vector<2x8x8xf32>, vector<2x8x8xf32> -> vector<2x8x8xf32>
    "tpu.trace_stop"() : () -> ()
    %cst_27 = arith.constant 0.353553385 : f32
    %92 = vector.broadcast %cst_27 : f32 to vector<2x8x8xf32>
    %93 = arith.mulf %91, %92 : vector<2x8x8xf32>
    %cst_28 = arith.constant dense<0xFF800000> : vector<2x8xf32>
    %94 = vector.multi_reduction <maximumf>, %93, %cst_28 [2] : vector<2x8x8xf32> to vector<2x8xf32>
    %95 = vector.shape_cast %94 : vector<2x8xf32> to vector<2x8x1xf32>
    %96 = vector.broadcast %95 : vector<2x8x1xf32> to vector<2x8x8xf32>
    %97 = arith.subf %93, %96 : vector<2x8x8xf32>
    %98 = math.exp %97 : vector<2x8x8xf32>
    %cst_29 = arith.constant dense<0.000000e+00> : vector<2x8xf32>
    %99 = vector.multi_reduction <add>, %98, %cst_29 [2] : vector<2x8x8xf32> to vector<2x8xf32>
    %100 = vector.shape_cast %99 : vector<2x8xf32> to vector<2x8x1xf32>
    %101 = tpu.reciprocal %100 {approx = true} : vector<2x8x1xf32> -> vector<2x8x1xf32>
    %102 = vector.broadcast %101 : vector<2x8x1xf32> to vector<2x8x8xf32>
    %103 = arith.mulf %98, %102 : vector<2x8x8xf32>
    "tpu.trace_start"() <{level = 10 : i32, message = "bqk,bkd->bqd"}> : () -> ()
    %cst_30 = arith.constant dense<0.000000e+00> : vector<2x8x8xf32>
    %104 = tpu.matmul %103, %90, %cst_30 {dimension_numbers = #tpu.dot_dimension_numbers<[2], [1], [1], [2], [0, 0, 0, 1, 1, 2], [0], [0]>} : vector<2x8x8xf32>, vector<2x8x8xf32>, vector<2x8x8xf32> -> vector<2x8x8xf32>
    "tpu.trace_stop"() : () -> ()
    %105 = vector.shape_cast %104 : vector<2x8x8xf32> to vector<16x8xf32>
    %c24 = arith.constant 24 : index
    %c128_31 = arith.constant 128 : index
    %106 = vector.load %arg2[%c24, %c128_31] : memref<128x512xf32, #tpu.memory_space<vmem>>, vector<8x128xf32>
    %cst_32 = arith.constant dense<0.000000e+00> : vector<16x128xf32>
    %107 = tpu.matmul %105, %106, %cst_32 {dimension_numbers = #tpu.dot_dimension_numbers<[1], [0], [0], [1], [0, 0, 1, 1], [], []>} : vector<16x8xf32>, vector<8x128xf32>, vector<16x128xf32> -> vector<16x128xf32>
    %108 = arith.addf %84, %107 : vector<16x128xf32>
    %109 = vector.broadcast %3 : vector<1x128xf32> to vector<16x128xf32>
    %110 = arith.addf %108, %109 : vector<16x128xf32>
    %111 = arith.addf %110, %0 : vector<16x128xf32>
    %cst_33 = arith.constant dense<0.000000e+00> : vector<128xf32>
    %112 = vector.multi_reduction <add>, %111, %cst_33 [0] : vector<16x128xf32> to vector<128xf32>
    %113 = vector.shape_cast %112 : vector<128xf32> to vector<1x128xf32>
    %cst_34 = arith.constant 1.600000e+01 : f32
    %114 = vector.broadcast %cst_34 : f32 to vector<1x128xf32>
    %115 = arith.divf %113, %114 : vector<1x128xf32>
    %116 = vector.broadcast %115 : vector<1x128xf32> to vector<16x128xf32>
    %117 = arith.subf %111, %116 : vector<16x128xf32>
    %118 = arith.mulf %117, %117 : vector<16x128xf32>
    %cst_35 = arith.constant dense<0.000000e+00> : vector<128xf32>
    %119 = vector.multi_reduction <add>, %118, %cst_35 [0] : vector<16x128xf32> to vector<128xf32>
    %120 = vector.shape_cast %119 : vector<128xf32> to vector<1x128xf32>
    %cst_36 = arith.constant 1.600000e+01 : f32
    %121 = vector.broadcast %cst_36 : f32 to vector<1x128xf32>
    %122 = arith.divf %120, %121 : vector<1x128xf32>
    %123 = vector.broadcast %115 : vector<1x128xf32> to vector<16x128xf32>
    %124 = arith.subf %111, %123 : vector<16x128xf32>
    %cst_37 = arith.constant 9.99999974E-6 : f32
    %125 = vector.broadcast %cst_37 : f32 to vector<1x128xf32>
    %126 = arith.addf %122, %125 : vector<1x128xf32>
    %127 = math.rsqrt %126 : vector<1x128xf32>
    %128 = vector.broadcast %127 : vector<1x128xf32> to vector<16x128xf32>
    %129 = arith.mulf %124, %128 : vector<16x128xf32>
    %130 = vector.broadcast %4 : vector<1x128xf32> to vector<16x128xf32>
    %131 = arith.mulf %129, %130 : vector<16x128xf32>
    %132 = vector.broadcast %5 : vector<1x128xf32> to vector<16x128xf32>
    %133 = arith.addf %131, %132 : vector<16x128xf32>
    %c0_38 = arith.constant 0 : index
    %c256 = arith.constant 256 : index
    %134 = vector.load %arg2[%c0_38, %c256] : memref<128x512xf32, #tpu.memory_space<vmem>>, vector<128x128xf32>
    %cst_39 = arith.constant dense<0.000000e+00> : vector<16x128xf32>
    %135 = tpu.matmul %133, %134, %cst_39 {dimension_numbers = #tpu.dot_dimension_numbers<[1], [0], [0], [1], [0, 0, 1, 1], [], []>} : vector<16x128xf32>, vector<128x128xf32>, vector<16x128xf32> -> vector<16x128xf32>
    %136 = vector.broadcast %6 : vector<1x128xf32> to vector<16x128xf32>
    %137 = arith.addf %135, %136 : vector<16x128xf32>
    %cst_40 = arith.constant 0.000000e+00 : f32
    %138 = vector.broadcast %cst_40 : f32 to vector<16x128xf32>
    %139 = arith.maximumf %137, %138 : vector<16x128xf32>
    %c0_41 = arith.constant 0 : index
    %c384 = arith.constant 384 : index
    %140 = vector.load %arg2[%c0_41, %c384] : memref<128x512xf32, #tpu.memory_space<vmem>>, vector<128x128xf32>
    %cst_42 = arith.constant dense<0.000000e+00> : vector<16x128xf32>
    %141 = tpu.matmul %139, %140, %cst_42 {dimension_numbers = #tpu.dot_dimension_numbers<[1], [0], [0], [1], [0, 0, 1, 1], [], []>} : vector<16x128xf32>, vector<128x128xf32>, vector<16x128xf32> -> vector<16x128xf32>
    %142 = vector.broadcast %7 : vector<1x128xf32> to vector<16x128xf32>
    %143 = arith.addf %141, %142 : vector<16x128xf32>
    %144 = arith.addf %143, %133 : vector<16x128xf32>
    %cst_43 = arith.constant dense<0.000000e+00> : vector<128xf32>
    %145 = vector.multi_reduction <add>, %144, %cst_43 [0] : vector<16x128xf32> to vector<128xf32>
    %146 = vector.shape_cast %145 : vector<128xf32> to vector<1x128xf32>
    %cst_44 = arith.constant 1.600000e+01 : f32
    %147 = vector.broadcast %cst_44 : f32 to vector<1x128xf32>
    %148 = arith.divf %146, %147 : vector<1x128xf32>
    %149 = vector.broadcast %148 : vector<1x128xf32> to vector<16x128xf32>
    %150 = arith.subf %144, %149 : vector<16x128xf32>
    %151 = arith.mulf %150, %150 : vector<16x128xf32>
    %cst_45 = arith.constant dense<0.000000e+00> : vector<128xf32>
    %152 = vector.multi_reduction <add>, %151, %cst_45 [0] : vector<16x128xf32> to vector<128xf32>
    %153 = vector.shape_cast %152 : vector<128xf32> to vector<1x128xf32>
    %cst_46 = arith.constant 1.600000e+01 : f32
    %154 = vector.broadcast %cst_46 : f32 to vector<1x128xf32>
    %155 = arith.divf %153, %154 : vector<1x128xf32>
    %156 = vector.broadcast %148 : vector<1x128xf32> to vector<16x128xf32>
    %157 = arith.subf %144, %156 : vector<16x128xf32>
    %cst_47 = arith.constant 9.99999974E-6 : f32
    %158 = vector.broadcast %cst_47 : f32 to vector<1x128xf32>
    %159 = arith.addf %155, %158 : vector<1x128xf32>
    %160 = math.rsqrt %159 : vector<1x128xf32>
    %161 = vector.broadcast %160 : vector<1x128xf32> to vector<16x128xf32>
    %162 = arith.mulf %157, %161 : vector<16x128xf32>
    %163 = vector.broadcast %8 : vector<1x128xf32> to vector<16x128xf32>
    %164 = arith.mulf %162, %163 : vector<16x128xf32>
    %165 = vector.broadcast %9 : vector<1x128xf32> to vector<16x128xf32>
    %166 = arith.addf %164, %165 : vector<16x128xf32>
    %c0_48 = arith.constant 0 : index
    %c0_49 = arith.constant 0 : index
    %167 = vector.load %arg4[%c0_48, %c0_49] : memref<16x128xf32, #tpu.memory_space<vmem>>, vector<16x128xf32>
    tpu.vector_store %arg4[%c0_48, %c0_49], %166 {strides = array<i32>} : memref<16x128xf32, #tpu.memory_space<vmem>>, vector<16x128xf32>,
    return
  }
  func.func @transform_0(%arg0: i32) -> (i32, i32) {
    %c0_i32 = arith.constant 0 : i32
    %c0_i32_0 = arith.constant 0 : i32
    %c0_i32_1 = arith.constant 0 : i32
    return %c0_i32, %c0_i32_0 : i32, i32
  }
  func.func @transform_1(%arg0: i32) -> (i32, i32) {
    %c0_i32 = arith.constant 0 : i32
    %c0_i32_0 = arith.constant 0 : i32
    %c0_i32_1 = arith.constant 0 : i32
    return %c0_i32, %c0_i32_0 : i32, i32
  }
  func.func @transform_2(%arg0: i32) -> (i32, i32) {
    %c0_i32 = arith.constant 0 : i32
    %c0_i32_0 = arith.constant 0 : i32
    %c0_i32_1 = arith.constant 0 : i32
    return %c0_i32, %c0_i32_0 : i32, i32
  }
  func.func @transform_3(%arg0: i32) -> (i32, i32) {
    %c0_i32 = arith.constant 0 : i32
    %c0_i32_0 = arith.constant 0 : i32
    %c0_i32_1 = arith.constant 0 : i32
    return %c0_i32, %c0_i32_0 : i32, i32
  }
}

</mosaic_0001>

<bundles_post_ra>
// kernel: encoder_layer_forward.1
= control target key start
LH: loop header
LB: loop body
LE: loop exit
PB: predicated region body
PF: predicated region fallthrough
CT: control target
= control target key end

     0   :  { %8 = vsyncpa [#allocation3], 0  ;;  %s2580_s12 = smov [#allocation2]   ;;  %s2801_s0 = inlined_call_operand.vmem [shape: f32[16,128], index: 0, kind: input, shape index: {}]   ;;  %s2802_s1 = inlined_call_operand.hbm [shape: f32[128,512], index: 1, kind: input, shape index: {}]   ;;  %s2803_s2 = inlined_call_operand.vmem [shape: f32[8,128], index: 2, kind: input, shape index: {}]   ;;  %s2804_s3 = inlined_call_operand.vmem [shape: f32[16,128], index: 3, kind: output, shape index: {}]  }
   0x1   :  { %s16_s13 = sshll.u32 %s2580_s12, 4  ;;  %s2556_s16 = scalar_lea.hbm %s2802_s1, 8192  ;;  %s17_s13 = int_to_ptr.vmem [resolvable:$true] %s16_s13 }
   0x2   :  { %p2557_p0 = scmp.ne.s32.totalorder %s2802_s1, %s2556_s16  ;;  %p2560_p1 = scmp.lt.u32.totalorder %s2556_s16, %s2802_s1 }
   0x4   :  { %p2562_p2 = pnand %p2560_p1, %p2557_p0 }
   0x6   :  { %2565 = shalt.err (!%p2562_p2)
}
   0x7   :  { %s2566_s21 = scalar_lea.vmem %s17_s13, 8192  ;;  %p2571_p4 = scmp.lt.s32.totalorder %s17_s13, %s17_s13 }
   0x8   :  { %p2567_p3 = scmp.ne.s32.totalorder %s17_s13, %s2566_s21  ;;  %p2572_p5 = scmp.lt.s32.totalorder %s2566_s21, %s2566_s21 }
   0xa   :  { %p2573_p6 = por %p2572_p5, %p2571_p4 }
   0xc   :  { %p2574_p7 = pnand %p2573_p6, %p2567_p3 }
   0xe   :  { %2577 = shalt.err (!%p2574_p7)
}
   0xf   :  { %s2581_s22 = smov 512   ;;  %s2582_s23 = smov 32  }
  0x10   :  { %22 = dma.hbm_to_vmem [thread:$0]  %s2802_s1, 8192, %s17_s13, [#allocation3], %s2581_s22, %s2581_s22, %s2582_s23  }
  0x11   :  { %2578 = dma.done.wait [#allocation3], 8192  }
  0x12   :  { %2579 = vsyncadd [#allocation3], 4294959104  ;;  %v31_v0 = vld [vmem:[#allocation2] sm:$0xff]  ;;  %v2637_v25 = vld [vmem:[%s2801_s0 + $0x8] sm:$0xff]  ;;  %v2583_v26 = vmov 0.0   ;;  %v47_v27 = vlaneseq  ;;  %vm2584_vm0 = vmmov 0  }
  0x13   :  { %v32_v1 = vld [vmem:[#allocation2 + $0x20] sm:$0xff]  ;;  %2232 = vmatprep.subr.mxu1 %v2583_v26  ;;  %2234 = vmatprep.mubr.msk.f32.mxu1 %vm2584_vm0, %v2583_v26  ;;  %vm129_vm1 = vcmask 64512   ;;  %s2587_s4 = smov 88   ;;  %s2588_s5 = smov 120  }
  0x14   :  { %v33_v2 = vld [vmem:[#allocation2 + $0x40] sm:$0xff]  ;;  %v2402_v3 = vpack.c.bf16 %v32_v1, %v31_v0  ;;  %v2641_v28 = vshrl.u32 %v47_v27, 7  ;;  %s2589_s6 = smov 56   ;;  %s2590_s7 = smov 80  }
  0x15   :  { %v34_v4 = vld [vmem:[#allocation2 + $0x60] sm:$0xff]  ;;  %s2591_s8 = smov 112   ;;  %s2592_s9 = smov 48  }
  0x16   :  { %v2406_v5 = vpack.c.bf16 %v34_v4, %v33_v2  ;;  %v35_v6 = vld [vmem:[#allocation2 + $0x80] sm:$0xff]  ;;  %2403 = vmatprep.subr.bf16.mxu0 %v2402_v3  ;;  %v49_v29 = vsub.s32 0, %v2641_v28  ;;  %v457_v4 = vld [vmem:[#allocation2 + $0x8] sm:$0xff]  ;;  %s2593_s10 = smov 72   ;;  %s2594_s11 = smov 104  }
  0x17   :  { %v36_v7 = vld [vmem:[#allocation2 + $0xa0] sm:$0xff]  ;;  %2405 = vmatpush3.bf16.msra.mxu0 %v2402_v3  ;;  %s2595_s12 = smov 40  }
  0x18   :  { %2407 = vmatprep.subr.bf16.mxu0 %v2406_v5  ;;  %v2410_v8 = vpack.c.bf16 %v36_v7, %v35_v6  ;;  %v2631_v9 = vld [vmem:[%s2801_s0] sm:$0xff]  ;;  %s2585_s0 = smov 96  }
  0x19   :  { %v37_v10 = vld [vmem:[#allocation2 + $0xc0] sm:$0xff]  ;;  %2229 = vmatprep.mubr.f32.mxu0 %v2631_v9 }
  0x1a   :  { %v38_v11 = vld [vmem:[#allocation2 + $0xe0] sm:$0xff] }
  0x1b   :  { %2409 = vmatpush3.bf16.msra.mxu0 %v2406_v5  ;;  %v2414_v12 = vpack.c.bf16 %v38_v11, %v37_v10  ;;  %v39_v13 = vld [vmem:[#allocation2 + $0x100] sm:$0xff] }
  0x1c   :  { %2411 = vmatprep.subr.bf16.mxu0 %v2410_v8  ;;  %v40_v14 = vld [vmem:[#allocation2 + $0x120] sm:$0xff] }
  0x1d   :  { %v2418_v15 = vpack.c.bf16 %v40_v14, %v39_v13  ;;  %v41_v16 = vld [vmem:[#allocation2 + $0x140] sm:$0xff] }
  0x1e   :  { %v42_v17 = vld [vmem:[#allocation2 + $0x160] sm:$0xff] }
  0x1f   :  { %2413 = vmatpush3.bf16.msra.mxu0 %v2410_v8  ;;  %v2422_v18 = vpack.c.bf16 %v42_v17, %v41_v16  ;;  %v43_v19 = vld [vmem:[#allocation2 + $0x180] sm:$0xff] }
  0x20   :  { %2415 = vmatprep.subr.bf16.mxu0 %v2414_v12  ;;  %v44_v20 = vld [vmem:[#allocation2 + $0x1a0] sm:$0xff] }
  0x21   :  { %v2426_v21 = vpack.c.bf16 %v44_v20, %v43_v19  ;;  %v45_v22 = vld [vmem:[#allocation2 + $0x1c0] sm:$0xff] }
  0x22   :  { %v46_v23 = vld [vmem:[#allocation2 + $0x1e0] sm:$0xff] }
  0x23   :  { %2417 = vmatpush3.bf16.msra.mxu0 %v2414_v12  ;;  %v2430_v24 = vpack.c.bf16 %v46_v23, %v45_v22  ;;  %v2649_v30 = vld [vmem:[%s2803_s2] sm:$0xff]  ;;  %s2586_s2 = smov 64  }
  0x24   :  { %2419 = vmatprep.subr.bf16.mxu0 %v2418_v15  ;;  %v50_v31 = vrot.slane %v2649_v30, %v49_v29 }
  0x27   :  { %2421 = vmatpush3.bf16.msra.mxu0 %v2418_v15 }
  0x28   :  { %2423 = vmatprep.subr.bf16.mxu0 %v2422_v18 }
  0x2b   :  { %2425 = vmatpush3.bf16.msra.mxu0 %v2422_v18 }
  0x2c   :  { %2427 = vmatprep.subr.bf16.mxu0 %v2426_v21 }
  0x2f   :  { %2429 = vmatpush3.bf16.msra.mxu0 %v2426_v21 }
  0x30   :  { %2431 = vmatprep.subr.bf16.mxu0 %v2430_v24 }
  0x33   :  { %2433 = vmatpush3.bf16.msra.mxu0 %v2430_v24 }
  0x34   :  { %2277 = vmatprep.subr.mxu0 %v457_v4 }
  0x36   :  { %2230 = vmatmul.mubr.f32.vlgmr.msra.gmra.mrb[0].mxu0 %v2637_v25 }
  0x37   :  { %2278 = vmatpush3.msra.mxu0 %v457_v4 }
  0x38   :  { %2292 = vmatprep.subr.mxu0 %v2583_v26 }
 0x109   :  { %v2231_v32 = vpop.f32.mrb[0].mxu0 }
 0x10a   :  { %v117_v33 = vpop.f32.mrb[1].mxu0  ;;  %v2655_v35 = vadd.f32 %v2231_v32, %v50_v31 }
 0x10b   :  { %v2652_v34 = vadd.f32 %v117_v33, %v50_v31 }
 0x10d   :  { %127 = vrot.lane.b32.xlu0 %v2652_v34, %s2585_s0 }
 0x111   :  { %205 = vrot.lane.b32.xlu0 %v2655_v35, %s2585_s0 }
 0x17f   :  { %v128_v36 = vpop.permute.xlu0 %127 }
 0x180   :  { %2233 = vmatpush3.xpose.msk.msra.mxu1 %vm129_vm1, %v128_v36 }
 0x181   :  { %2237 = vmatprep.subr.mxu1 %v2583_v26 }
 0x183   :  { %2235 = vmatmul.mubr.msk.f32.vlgmr.msra.gmra.mrb[0].mxu1 %vm129_vm1, %v2652_v34  ;;  %v206_v37 = vpop.permute.xlu0 %205 }
 0x184   :  { %2238 = vmatpush3.xpose.msk.msra.mxu1 %vm129_vm1, %v206_v37  ;;  %2239 = vmatprep.mubr.msk.f32.mxu1 %vm2584_vm0, %v2583_v26 }
 0x185   :  { %2242 = vmatprep.subr.mxu1 %v2583_v26 }
 0x187   :  { %2240 = vmatmul.mubr.msk.f32.vlgmr.msra.gmra.mrb[2].mxu1 %vm129_vm1, %v2655_v35 }
 0x188   :  { %2244 = vmatprep.mubr.msk.f32.mxu1 %vm2584_vm0, %v2583_v26 }
 0x256   :  { %v200_v38 = vpop.f32.mrb[0].mxu1 }
 0x257   :  { %v281_v39 = vmul.f32 0.35355338, %v200_v38  ;;  %v2236_v40 = vpop.f32.mrb[1].mxu1 }
 0x259   :  { %v283_v41 = vsel %vm129_vm1, %v281_v39, -inf }
 0x25a   :  { %284 = vmax.xlane.f32.xlu1 %v283_v41  ;;  %v277_v42 = vpop.f32.mrb[2].mxu1 }
 0x25b   :  { %v282_v43 = vmul.f32 0.35355338, %v277_v42  ;;  %v2241_v44 = vpop.f32.mrb[3].mxu1 }
 0x25d   :  { %v286_v45 = vsel %vm129_vm1, %v282_v43, -inf }
 0x25e   :  { %287 = vmax.xlane.f32.xlu1 %v286_v45 }
 0x26f   :  { %305 = vrot.lane.b32.xlu1 %v2652_v34, %s2586_s2 }
 0x273   :  { %381 = vrot.lane.b32.xlu1 %v2655_v35, %s2586_s2 }
 0x277   :  { %460 = vrot.lane.b32.xlu1 %v2652_v34, %s2587_s4 }
 0x27b   :  { %458 = vrot.lane.b32.xlu1 %v2652_v34, %s2588_s5 }
 0x2e7   :  { %v285_v46 = vpop.xlane.xlu1 %284 }
 0x2e8   :  { %v289_v47 = vsub.f32 %v281_v39, %v285_v46  ;;  %v790_v39 = vld [vmem:[#allocation2 + $0x28] sm:$0xff] }
 0x2ea   :  { %v291_v48 = vmul.f32 1.442695, %v289_v47 }
 0x2eb   :  { %v288_v49 = vpop.xlane.xlu1 %287 }
 0x2ec   :  { %2520 = vpow2.f32 %v291_v48  ;;  %v290_v50 = vsub.f32 %v282_v43, %v288_v49 }
 0x2ee   :  { %v293_v51 = vmul.f32 1.442695, %v290_v50 }
 0x2ef   :  { %v306_v52 = vpop.permute.xlu1 %305 }
 0x2f0   :  { %2522 = vpow2.f32 %v293_v51  ;;  %2243 = vmatpush3.msra.mxu1 %v306_v52 }
 0x2f1   :  { %2247 = vmatprep.subr.mxu1 %v2583_v26 }
 0x2f3   :  { %v382_v57 = vpop.permute.xlu1 %381 }
 0x2f6   :  { %v2521_v53 = vpop.eup %2520 }
 0x2f7   :  { %v295_v54 = vsel %vm129_vm1, %v2521_v53, 0.0  ;;  %v461_v58 = vpop.permute.xlu1 %460 }
 0x2f8   :  { %296 = vadd.xlane.f32.xlu0 %v295_v54 }
 0x2fa   :  { %v2523_v55 = vpop.eup %2522 }
 0x2fb   :  { %v298_v56 = vsel %vm129_vm1, %v2523_v55, 0.0  ;;  %v459_v59 = vpop.permute.xlu1 %458 }
 0x2fc   :  { %299 = vadd.xlane.f32.xlu1 %v298_v56 }
 0x30d   :  { %536 = vrot.lane.b32.xlu1 %v2655_v35, %s2588_s5 }
 0x30e   :  { %538 = vrot.lane.b32.xlu0 %v2655_v35, %s2587_s4 }
 0x385   :  { %v297_v60 = vpop.xlane.xlu0 %296 }
 0x386   :  { %2524 = vrcp.f32 %v297_v60 }
 0x389   :  { %v300_v61 = vpop.xlane.xlu1 %299  ;;  %v539_v2 = vpop.permute.xlu0 %538 }
 0x38a   :  { %2526 = vrcp.f32 %v300_v61 }
 0x38d   :  { %v537_v3 = vpop.permute.xlu1 %536 }
 0x390   :  { %v2525_v62 = vpop.eup %2524 }
 0x391   :  { %v303_v63 = vmul.f32 %v2525_v62, %v2521_v53 }
 0x393   :  { %2245 = vmatmul.mubr.msk.f32.vlgmr.msra.gmra.mrb[4].mxu1 %vm129_vm1, %v303_v63 }
 0x394   :  { %v2527_v0 = vpop.eup %2526  ;;  %2248 = vmatpush3.msra.mxu1 %v382_v57  ;;  %2249 = vmatprep.mubr.msk.f32.mxu1 %vm2584_vm0, %v2583_v26 }
 0x395   :  { %v304_v1 = vmul.f32 %v2527_v0, %v2523_v55  ;;  %2252 = vmatprep.subr.mxu1 %v2583_v26 }
 0x397   :  { %2250 = vmatmul.mubr.msk.f32.vlgmr.msra.gmra.mrb[6].mxu1 %vm129_vm1, %v304_v1 }
 0x398   :  { %2254 = vmatprep.mubr.msk.f32.mxu1 %vm2584_vm0, %v2583_v26 }
 0x39b   :  { %2253 = vmatpush3.xpose.msk.msra.mxu1 %vm129_vm1, %v461_v58 }
 0x39c   :  { %2257 = vmatprep.subr.mxu1 %v2583_v26 }
 0x39e   :  { %2255 = vmatmul.mubr.msk.f32.vlgmr.msra.gmra.mrb[8].mxu1 %vm129_vm1, %v459_v59 }
 0x39f   :  { %2258 = vmatpush3.xpose.msk.msra.mxu1 %vm129_vm1, %v539_v2  ;;  %2259 = vmatprep.mubr.msk.f32.mxu1 %vm2584_vm0, %v2583_v26 }
 0x3a0   :  { %2262 = vmatprep.subr.mxu1 %v2583_v26 }
 0x3a2   :  { %2260 = vmatmul.mubr.msk.f32.vlgmr.msra.gmra.mrb[10].mxu1 %vm129_vm1, %v537_v3 }
 0x3a3   :  { %2264 = vmatprep.mubr.msk.f32.mxu1 %vm2584_vm0, %v2583_v26 }
 0x466   :  { %v377_v5 = vpop.f32.mrb[4].mxu1 }
 0x467   :  { %v2246_v6 = vpop.f32.mrb[5].mxu1  ;;  %2279 = vmatprep.mubr.msk.f32.mxu0 %vm129_vm1, %v377_v5 }
 0x46a   :  { %v453_v7 = vpop.f32.mrb[6].mxu1 }
 0x46b   :  { %v2251_v8 = vpop.f32.mrb[7].mxu1  ;;  %2280 = vmatmul.mubr.msk.f32.vlgmr.msra.gmra.mrb[2].mxu0 %vm129_vm1, %v453_v7 }
 0x46c   :  { %2294 = vmatprep.mubr.msk.f32.mxu0 %vm2584_vm0, %v2583_v26  ;;  %v1285_v8 = vld [vmem:[#allocation2 + $0x48] sm:$0xff] }
 0x471   :  { %v532_v10 = vpop.f32.mrb[8].mxu1 }
 0x472   :  { %v614_v11 = vmul.f32 0.35355338, %v532_v10  ;;  %v2256_v12 = vpop.f32.mrb[9].mxu1 }
 0x474   :  { %v616_v13 = vsel %vm129_vm1, %v614_v11, -inf }
 0x475   :  { %617 = vmax.xlane.f32.xlu1 %v616_v13  ;;  %v610_v14 = vpop.f32.mrb[10].mxu1 }
 0x476   :  { %v615_v15 = vmul.f32 0.35355338, %v610_v14  ;;  %v2261_v16 = vpop.f32.mrb[11].mxu1 }
 0x478   :  { %v619_v17 = vsel %vm129_vm1, %v615_v15, -inf }
 0x479   :  { %620 = vmax.xlane.f32.xlu0 %v619_v17 }
 0x48f   :  { %714 = vrot.lane.b32.xlu0 %v2655_v35, %s2589_s6 }
 0x493   :  { %1033 = vrot.lane.b32.xlu0 %v2655_v35, %s2590_s7 }
 0x502   :  { %v618_v18 = vpop.xlane.xlu1 %617 }
 0x503   :  { %v622_v19 = vsub.f32 %v614_v11, %v618_v18 }
 0x505   :  { %v624_v20 = vmul.f32 1.442695, %v622_v19 }
 0x506   :  { %v621_v21 = vpop.xlane.xlu0 %620 }
 0x507   :  { %2528 = vpow2.f32 %v624_v20  ;;  %v623_v22 = vsub.f32 %v615_v15, %v621_v21 }
 0x509   :  { %v626_v23 = vmul.f32 1.442695, %v623_v22 }
 0x50a   :  { %v715_v40 = vpop.permute.xlu0 %714 }
 0x50b   :  { %2530 = vpow2.f32 %v626_v23 }
 0x50e   :  { %v1034_v49 = vpop.permute.xlu0 %1033 }
 0x511   :  { %v2529_v24 = vpop.eup %2528 }
 0x512   :  { %v628_v27 = vsel %vm129_vm1, %v2529_v24, 0.0 }
 0x513   :  { %629 = vadd.xlane.f32.xlu1 %v628_v27 }
 0x515   :  { %v2531_v29 = vpop.eup %2530 }
 0x516   :  { %v631_v31 = vsel %vm129_vm1, %v2531_v29, 0.0 }
 0x517   :  { %632 = vadd.xlane.f32.xlu1 %v631_v31 }
 0x528   :  { %638 = vrot.lane.b32.xlu1 %v2652_v34, %s2589_s6 }
 0x52c   :  { %955 = vrot.lane.b32.xlu1 %v2652_v34, %s2590_s7 }
 0x530   :  { %953 = vrot.lane.b32.xlu1 %v2652_v34, %s2591_s8 }
 0x534   :  { %1031 = vrot.lane.b32.xlu1 %v2655_v35, %s2591_s8 }
 0x5a0   :  { %v630_v32 = vpop.xlane.xlu1 %629 }
 0x5a1   :  { %2532 = vrcp.f32 %v630_v32 }
 0x5a4   :  { %v633_v33 = vpop.xlane.xlu1 %632 }
 0x5a5   :  { %2534 = vrcp.f32 %v633_v33 }
 0x5a8   :  { %v639_v36 = vpop.permute.xlu1 %638 }
 0x5a9   :  { %2263 = vmatpush3.msra.mxu1 %v639_v36 }
 0x5aa   :  { %2267 = vmatprep.subr.mxu1 %v2583_v26 }
 0x5ab   :  { %v2533_v37 = vpop.eup %2532 }
 0x5ac   :  { %v636_v38 = vmul.f32 %v2533_v37, %v2529_v24  ;;  %v956_v43 = vpop.permute.xlu1 %955 }
 0x5ae   :  { %2265 = vmatmul.mubr.msk.f32.vlgmr.msra.gmra.mrb[12].mxu1 %vm129_vm1, %v636_v38 }
 0x5af   :  { %v2535_v41 = vpop.eup %2534  ;;  %2268 = vmatpush3.msra.mxu1 %v715_v40  ;;  %2269 = vmatprep.mubr.msk.f32.mxu1 %vm2584_vm0, %v2583_v26 }
 0x5b0   :  { %v637_v42 = vmul.f32 %v2535_v41, %v2531_v29  ;;  %2272 = vmatprep.subr.mxu1 %v790_v39  ;;  %v954_v48 = vpop.permute.xlu1 %953 }
 0x5b2   :  { %2270 = vmatmul.mubr.msk.f32.vlgmr.msra.gmra.mrb[14].mxu1 %vm129_vm1, %v637_v42 }
 0x5b3   :  { %2273 = vmatpush3.msra.mxu1 %v790_v39 }
 0x5b4   :  { %2282 = vmatprep.subr.mxu1 %v2583_v26  ;;  %v1032_v50 = vpop.permute.xlu1 %1031 }
 0x681   :  { %v710_v44 = vpop.f32.mrb[12].mxu1 }
 0x682   :  { %v2266_v45 = vpop.f32.mrb[13].mxu1  ;;  %2274 = vmatprep.mubr.msk.f32.mxu1 %vm129_vm1, %v710_v44 }
 0x685   :  { %v786_v46 = vpop.f32.mrb[14].mxu1 }
 0x686   :  { %v2271_v47 = vpop.f32.mrb[15].mxu1  ;;  %2275 = vmatmul.mubr.msk.f32.vlgmr.msra.gmra.mrb[16].mxu1 %vm129_vm1, %v786_v46 }
 0x687   :  { %2283 = vmatpush3.xpose.msk.msra.mxu1 %vm129_vm1, %v956_v43  ;;  %2284 = vmatprep.mubr.msk.f32.mxu1 %vm2584_vm0, %v2583_v26 }
 0x688   :  { %2287 = vmatprep.subr.mxu1 %v2583_v26 }
 0x68a   :  { %2285 = vmatmul.mubr.msk.f32.vlgmr.msra.gmra.mrb[18].mxu1 %vm129_vm1, %v954_v48 }
 0x68b   :  { %2288 = vmatpush3.xpose.msk.msra.mxu1 %vm129_vm1, %v1034_v49  ;;  %2289 = vmatprep.mubr.msk.f32.mxu1 %vm2584_vm0, %v2583_v26 }
 0x68c   :  { %2297 = vmatprep.subr.mxu1 %v2583_v26 }
 0x68e   :  { %2290 = vmatmul.mubr.msk.f32.vlgmr.msra.gmra.mrb[20].mxu1 %vm129_vm1, %v1032_v50 }
 0x68f   :  { %2299 = vmatprep.mubr.msk.f32.mxu1 %vm2584_vm0, %v2583_v26 }
 0x759   :  { %v2733_v51 = vpop.f32.mrb[16].mxu1 }
 0x75a   :  { %v2735_v52 = vpop.f32.mrb[17].mxu1 }
 0x75d   :  { %v1027_v53 = vpop.f32.mrb[18].mxu1 }
 0x75e   :  { %v1109_v54 = vmul.f32 0.35355338, %v1027_v53  ;;  %v2286_v55 = vpop.f32.mrb[19].mxu1 }
 0x760   :  { %v1111_v56 = vsel %vm129_vm1, %v1109_v54, -inf }
 0x761   :  { %1112 = vmax.xlane.f32.xlu0 %v1111_v56  ;;  %v1105_v57 = vpop.f32.mrb[20].mxu1 }
 0x762   :  { %v1110_v58 = vmul.f32 0.35355338, %v1105_v57  ;;  %v2291_v59 = vpop.f32.mrb[21].mxu1 }
 0x764   :  { %v1114_v60 = vsel %vm129_vm1, %v1110_v58, -inf }
 0x765   :  { %1115 = vmax.xlane.f32.xlu1 %v1114_v60 }
 0x776   :  { %1133 = vrot.lane.b32.xlu1 %v2652_v34, %s2592_s9 }
 0x77a   :  { %1371 = vrot.lane.b32.xlu1 %v2652_v34, %s2593_s10 }
 0x77e   :  { %1449 = vrot.lane.b32.xlu1 %v2655_v35, %s2593_s10 }
 0x782   :  { %1447 = vrot.lane.b32.xlu1 %v2655_v35, %s2594_s11 }
 0x7ee   :  { %v1113_v61 = vpop.xlane.xlu0 %1112 }
 0x7ef   :  { %v1117_v62 = vsub.f32 %v1109_v54, %v1113_v61 }
 0x7f1   :  { %v1119_v63 = vmul.f32 1.442695, %v1117_v62  ;;  %v1831_v62 = vld [vmem:[#allocation2 + $0x30] sm:$0xff] }
 0x7f2   :  { %v1116_v0 = vpop.xlane.xlu1 %1115 }
 0x7f3   :  { %2536 = vpow2.f32 %v1119_v63  ;;  %v1118_v1 = vsub.f32 %v1110_v58, %v1116_v0  ;;  %v1832_v0 = vld [vmem:[#allocation2 + $0x50] sm:$0xff] }
 0x7f5   :  { %v1121_v2 = vmul.f32 1.442695, %v1118_v1  ;;  %v1833_v1 = vld [vmem:[#allocation2 + $0x70] sm:$0xff] }
 0x7f6   :  { %v1134_v3 = vpop.permute.xlu1 %1133 }
 0x7f7   :  { %2538 = vpow2.f32 %v1121_v2  ;;  %2293 = vmatpush3.msra.mxu0 %v1134_v3  ;;  %v2438_v2 = vpack.c.bf16 %v1833_v1, %v1832_v0  ;;  %v1834_v3 = vld [vmem:[#allocation2 + $0x90] sm:$0xff] }
 0x7f8   :  { %2302 = vmatprep.subr.mxu0 %v1285_v8 }
 0x7fa   :  { %v1372_v17 = vpop.permute.xlu1 %1371 }
 0x7fd   :  { %v2537_v4 = vpop.eup %2536 }
 0x7fe   :  { %v1123_v5 = vsel %vm129_vm1, %v2537_v4, 0.0  ;;  %v1450_v21 = vpop.permute.xlu1 %1449 }
 0x7ff   :  { %1124 = vadd.xlane.f32.xlu0 %v1123_v5 }
 0x801   :  { %v2539_v6 = vpop.eup %2538 }
 0x802   :  { %v1126_v7 = vsel %vm129_vm1, %v2539_v6, 0.0  ;;  %v1448_v24 = vpop.permute.xlu1 %1447 }
 0x803   :  { %1127 = vadd.xlane.f32.xlu0 %v1126_v7  ;;  %v1837_v7 = vld [vmem:[#allocation2 + $0xf0] sm:$0xff] }
 0x819   :  { %1209 = vrot.lane.b32.xlu0 %v2655_v35, %s2592_s9 }
 0x81d   :  { %1369 = vrot.lane.b32.xlu0 %v2652_v34, %s2594_s11 }
 0x88c   :  { %v1125_v10 = vpop.xlane.xlu0 %1124 }
 0x88d   :  { %2540 = vrcp.f32 %v1125_v10  ;;  %v1838_v10 = vld [vmem:[#allocation2 + $0x110] sm:$0xff] }
 0x890   :  { %v1128_v11 = vpop.xlane.xlu0 %1127 }
 0x891   :  { %2542 = vrcp.f32 %v1128_v11  ;;  %v1839_v11 = vld [vmem:[#allocation2 + $0x130] sm:$0xff] }
 0x894   :  { %v1210_v12 = vpop.permute.xlu0 %1209 }
 0x895   :  { %2298 = vmatpush3.msra.mxu1 %v1210_v12  ;;  %v1840_v12 = vld [vmem:[#allocation2 + $0x150] sm:$0xff] }
 0x896   :  { %2307 = vmatprep.subr.mxu1 %v2583_v26 }
 0x897   :  { %v2541_v13 = vpop.eup %2540 }
 0x898   :  { %v1131_v14 = vmul.f32 %v2541_v13, %v2537_v4  ;;  %v1370_v18 = vpop.permute.xlu0 %1369  ;;  %v1835_v4 = vld [vmem:[#allocation2 + $0xb0] sm:$0xff]  ;;  %v2450_v13 = vpack.c.bf16 %v1839_v11, %v1838_v10 }
 0x899   :  { %v2442_v5 = vpack.c.bf16 %v1835_v4, %v1834_v3 }
 0x89a   :  { %2295 = vmatmul.mubr.msk.f32.vlgmr.msra.gmra.mrb[4].mxu0 %vm129_vm1, %v1131_v14  ;;  %v1841_v14 = vld [vmem:[#allocation2 + $0x170] sm:$0xff] }
 0x89b   :  { %v2543_v15 = vpop.eup %2542  ;;  %2303 = vmatpush3.msra.mxu0 %v1285_v8 }
 0x89c   :  { %v1132_v16 = vmul.f32 %v2543_v15, %v2539_v6  ;;  %2312 = vmatprep.subr.mxu0 %v2583_v26  ;;  %v1836_v6 = vld [vmem:[#allocation2 + $0xd0] sm:$0xff]  ;;  %v2454_v15 = vpack.c.bf16 %v1841_v14, %v1840_v12  ;;  %v1820_v12 = vsub.s32 2, %v2641_v28 }
 0x89d   :  { %v2446_v8 = vpack.c.bf16 %v1837_v7, %v1836_v6 }
 0x89e   :  { %2300 = vmatmul.mubr.msk.f32.vlgmr.msra.gmra.mrb[22].mxu1 %vm129_vm1, %v1132_v16  ;;  %v1842_v16 = vld [vmem:[#allocation2 + $0x190] sm:$0xff]  ;;  %v1821_v14 = vrot.slane %v2649_v30, %v1820_v12 }
 0x89f   :  { %2308 = vmatpush3.xpose.msk.msra.mxu1 %vm129_vm1, %v1372_v17  ;;  %2309 = vmatprep.mubr.msk.f32.mxu1 %vm2584_vm0, %v2583_v26  ;;  %v1843_v17 = vld [vmem:[#allocation2 + $0x1b0] sm:$0xff] }
 0x8a0   :  { %2317 = vmatprep.subr.mxu1 %v2583_v26 }
 0x8a2   :  { %2310 = vmatmul.mubr.msk.f32.vlgmr.msra.gmra.mrb[24].mxu1 %vm129_vm1, %v1370_v18  ;;  %v2458_v18 = vpack.c.bf16 %v1843_v17, %v1842_v16 }
 0x8a3   :  { %2319 = vmatprep.mubr.msk.f32.mxu1 %vm2584_vm0, %v2583_v26 }
 0x96d   :  { %v1205_v19 = vpop.f32.mrb[4].mxu0 }
 0x96e   :  { %v2296_v20 = vpop.f32.mrb[5].mxu0  ;;  %2304 = vmatprep.mubr.msk.f32.mxu0 %vm129_vm1, %v1205_v19  ;;  %v1844_v19 = vld [vmem:[#allocation2 + $0x1d0] sm:$0xff] }
 0x96f   :  { %v1845_v20 = vld [vmem:[#allocation2 + $0x1f0] sm:$0xff] }
 0x971   :  { %v1281_v22 = vpop.f32.mrb[22].mxu1 }
 0x972   :  { %v2301_v23 = vpop.f32.mrb[23].mxu1  ;;  %2305 = vmatmul.mubr.msk.f32.vlgmr.msra.gmra.mrb[2].mxu0 %vm129_vm1, %v1281_v22  ;;  %v1927_v22 = vld [vmem:[#allocation2 + $0x18] sm:$0xff] }
 0x973   :  { %2313 = vmatpush3.xpose.msk.msra.mxu0 %vm129_vm1, %v1450_v21  ;;  %2314 = vmatprep.mubr.msk.f32.mxu0 %vm2584_vm0, %v2583_v26  ;;  %v2462_v21 = vpack.c.bf16 %v1845_v20, %v1844_v19  ;;  %v1928_v23 = vld [vmem:[#allocation2 + $0x38] sm:$0xff] }
 0x974   :  { %2322 = vmatprep.subr.mxu0 %v2583_v26 }
 0x975   :  { %v1443_v27 = vpop.f32.mrb[24].mxu1 }
 0x976   :  { %v1525_v29 = vmul.f32 0.35355338, %v1443_v27  ;;  %v2311_v31 = vpop.f32.mrb[25].mxu1  ;;  %2315 = vmatmul.mubr.msk.f32.vlgmr.msra.gmra.mrb[6].mxu0 %vm129_vm1, %v1448_v24  ;;  %v1929_v24 = vld [vmem:[#allocation2 + $0x58] sm:$0xff]  ;;  %v2466_v27 = vpack.c.bf16 %v1928_v23, %v1927_v22 }
 0x977   :  { %2324 = vmatprep.mubr.msk.f32.mxu0 %vm2584_vm0, %v2583_v26  ;;  %v1941_v23 = vld [vmem:[#allocation2 + $0x1d8] sm:$0xff] }
 0x978   :  { %v1527_v32 = vsel %vm129_vm1, %v1525_v29, -inf }
 0x979   :  { %1528 = vmax.xlane.f32.xlu0 %v1527_v32  ;;  %v1931_v32 = vld [vmem:[#allocation2 + $0x98] sm:$0xff] }
 0xa06   :  { %v1529_v33 = vpop.xlane.xlu0 %1528 }
 0xa07   :  { %v1533_v36 = vsub.f32 %v1525_v29, %v1529_v33  ;;  %v1930_v29 = vld [vmem:[#allocation2 + $0x78] sm:$0xff] }
 0xa08   :  { %v2470_v31 = vpack.c.bf16 %v1930_v29, %v1929_v24  ;;  %v1932_v33 = vld [vmem:[#allocation2 + $0xb8] sm:$0xff]  ;;  %v1848_v29 = vsub.s32 4, %v2641_v28 }
 0xa09   :  { %v1535_v37 = vmul.f32 1.442695, %v1533_v36  ;;  %v2474_v36 = vpack.c.bf16 %v1932_v33, %v1931_v32  ;;  %v1942_v24 = vld [vmem:[#allocation2 + $0x1f8] sm:$0xff] }
 0xa0b   :  { %2544 = vpow2.f32 %v1535_v37  ;;  %v1933_v37 = vld [vmem:[#allocation2 + $0xd8] sm:$0xff] }
 0xa15   :  { %v2545_v38 = vpop.eup %2544 }
 0xa16   :  { %v1539_v39 = vsel %vm129_vm1, %v2545_v38, 0.0 }
 0xa17   :  { %1540 = vadd.xlane.f32.xlu0 %v1539_v39 }
 0xa49   :  { %v1521_v40 = vpop.f32.mrb[6].mxu0 }
 0xa4a   :  { %v1526_v41 = vmul.f32 0.35355338, %v1521_v40  ;;  %v2316_v42 = vpop.f32.mrb[7].mxu0  ;;  %v1935_v40 = vld [vmem:[#allocation2 + $0x118] sm:$0xff] }
 0xa4c   :  { %v1530_v43 = vsel %vm129_vm1, %v1526_v41, -inf }
 0xa4d   :  { %1531 = vmax.xlane.f32.xlu1 %v1530_v43  ;;  %v1937_v43 = vld [vmem:[#allocation2 + $0x158] sm:$0xff] }
 0xa5e   :  { %1549 = vrot.lane.b32.xlu1 %v2652_v34, %s2595_s12  ;;  %v1701_v34 = vld [vmem:[#allocation2 + $0x68] sm:$0xff] }
 0xaa4   :  { %v1541_v26 = vpop.xlane.xlu0 %1540 }
 0xaa5   :  { %2546 = vrcp.f32 %v1541_v26  ;;  %v1938_v26 = vld [vmem:[#allocation2 + $0x178] sm:$0xff] }
 0xaaf   :  { %v2547_v45 = vpop.eup %2546 }
 0xab0   :  { %v1547_v48 = vmul.f32 %v2547_v45, %v2545_v38  ;;  %v1934_v38 = vld [vmem:[#allocation2 + $0xf8] sm:$0xff] }
 0xab1   :  { %v2478_v39 = vpack.c.bf16 %v1934_v38, %v1933_v37  ;;  %v1939_v45 = vld [vmem:[#allocation2 + $0x198] sm:$0xff] }
 0xada   :  { %v1532_v44 = vpop.xlane.xlu1 %1531 }
 0xadb   :  { %v1534_v46 = vsub.f32 %v1526_v41, %v1532_v44  ;;  %v1936_v41 = vld [vmem:[#allocation2 + $0x138] sm:$0xff]  ;;  %v2486_v44 = vpack.c.bf16 %v1938_v26, %v1937_v43 }
 0xadc   :  { %v2482_v42 = vpack.c.bf16 %v1936_v41, %v1935_v40  ;;  %v1945_v40 = vsub.s32 5, %v2641_v28 }
 0xadd   :  { %v1537_v47 = vmul.f32 1.442695, %v1534_v46  ;;  %v1940_v46 = vld [vmem:[#allocation2 + $0x1b8] sm:$0xff] }
 0xade   :  { %v1550_v49 = vpop.permute.xlu1 %1549  ;;  %v1946_v41 = vrot.slane %v2649_v30, %v1945_v40 }
 0xadf   :  { %2548 = vpow2.f32 %v1537_v47  ;;  %2318 = vmatpush3.msra.mxu1 %v1550_v49  ;;  %v2490_v47 = vpack.c.bf16 %v1940_v46, %v1939_v45 }
 0xae0   :  { %2320 = vmatmul.mubr.msk.f32.vlgmr.msra.gmra.mrb[26].mxu1 %vm129_vm1, %v1547_v48  ;;  %v1787_v48 = vsub.s32 1, %v2641_v28 }
 0xae2   :  { %v1788_v49 = vrot.slane %v2649_v30, %v1787_v48 }
 0xae9   :  { %v2549_v50 = vpop.eup %2548 }
 0xaea   :  { %v1542_v53 = vsel %vm129_vm1, %v2549_v50, 0.0 }
 0xaeb   :  { %1543 = vadd.xlane.f32.xlu0 %v1542_v53 }
 0xb01   :  { %1625 = vrot.lane.b32.xlu0 %v2655_v35, %s2595_s12  ;;  %v1830_v35 = vld [vmem:[#allocation2 + $0x10] sm:$0xff] }
 0xb02   :  { %v2434_v63 = vpack.c.bf16 %v1831_v62, %v1830_v35 }
 0xb04   :  { %2435 = vmatprep.subr.bf16.mxu1 %v2434_v63 }
 0xb05   :  { %2437 = vmatpush3.bf16.msra.mxu1 %v2434_v63 }
 0xb06   :  { %2439 = vmatprep.subr.bf16.mxu1 %v2438_v2 }
 0xb09   :  { %2441 = vmatpush3.bf16.msra.mxu1 %v2438_v2 }
 0xb0a   :  { %2443 = vmatprep.subr.bf16.mxu1 %v2442_v5 }
 0xb0d   :  { %2445 = vmatpush3.bf16.msra.mxu1 %v2442_v5 }
 0xb0e   :  { %2447 = vmatprep.subr.bf16.mxu1 %v2446_v8 }
 0xb11   :  { %2449 = vmatpush3.bf16.msra.mxu1 %v2446_v8 }
 0xb12   :  { %2451 = vmatprep.subr.bf16.mxu1 %v2450_v13 }
 0xb15   :  { %2453 = vmatpush3.bf16.msra.mxu1 %v2450_v13  ;;  %v1826_v13 = vsub.s32 3, %v2641_v28 }
 0xb16   :  { %2455 = vmatprep.subr.bf16.mxu1 %v2454_v15 }
 0xb17   :  { %v1827_v17 = vrot.slane %v2649_v30, %v1826_v13 }
 0xb19   :  { %2457 = vmatpush3.bf16.msra.mxu1 %v2454_v15 }
 0xb1a   :  { %2459 = vmatprep.subr.bf16.mxu1 %v2458_v18 }
 0xb1d   :  { %2461 = vmatpush3.bf16.msra.mxu1 %v2458_v18 }
 0xb1e   :  { %2463 = vmatprep.subr.bf16.mxu1 %v2462_v21 }
 0xb21   :  { %2465 = vmatpush3.bf16.msra.mxu1 %v2462_v21 }
 0xb78   :  { %v1544_v54 = vpop.xlane.xlu0 %1543 }
 0xb79   :  { %2550 = vrcp.f32 %v1544_v54 }
 0xb7c   :  { %v1626_v55 = vpop.permute.xlu0 %1625 }
 0xb7d   :  { %2323 = vmatpush3.msra.mxu0 %v1626_v55 }
 0xb7e   :  { %2327 = vmatprep.subr.mxu0 %v1701_v34 }
 0xb83   :  { %v2551_v56 = vpop.eup %2550 }
 0xb84   :  { %v1548_v57 = vmul.f32 %v2551_v56, %v2549_v50 }
 0xb86   :  { %2325 = vmatmul.mubr.msk.f32.vlgmr.msra.gmra.mrb[8].mxu0 %vm129_vm1, %v1548_v57 }
 0xb87   :  { %2328 = vmatpush3.msra.mxu0 %v1701_v34 }
 0xb88   :  { %2467 = vmatprep.subr.bf16.mxu0 %v2466_v27 }
 0xbb3   :  { %v1621_v58 = vpop.f32.mrb[26].mxu1 }
 0xbb4   :  { %v2321_v59 = vpop.f32.mrb[27].mxu1  ;;  %2329 = vmatprep.mubr.msk.f32.mxu0 %vm129_vm1, %v1621_v58 }
 0xc59   :  { %v1697_v60 = vpop.f32.mrb[8].mxu0 }
 0xc5a   :  { %v2326_v61 = vpop.f32.mrb[9].mxu0  ;;  %2330 = vmatmul.mubr.msk.f32.vlgmr.msra.gmra.mrb[2].mxu0 %vm129_vm1, %v1697_v60 }
 0xc5b   :  { %2469 = vmatpush3.bf16.msra.mxu0 %v2466_v27  ;;  %v2494_v27 = vpack.c.bf16 %v1942_v24, %v1941_v23 }
 0xc5c   :  { %2471 = vmatprep.subr.bf16.mxu0 %v2470_v31 }
 0xc5f   :  { %2473 = vmatpush3.bf16.msra.mxu0 %v2470_v31  ;;  %v1849_v31 = vrot.slane %v2649_v30, %v1848_v29 }
 0xc60   :  { %2475 = vmatprep.subr.bf16.mxu0 %v2474_v36 }
 0xc63   :  { %2477 = vmatpush3.bf16.msra.mxu0 %v2474_v36 }
 0xc64   :  { %2479 = vmatprep.subr.bf16.mxu0 %v2478_v39 }
 0xc67   :  { %2481 = vmatpush3.bf16.msra.mxu0 %v2478_v39 }
 0xc68   :  { %2483 = vmatprep.subr.bf16.mxu0 %v2482_v42 }
 0xc6b   :  { %2485 = vmatpush3.bf16.msra.mxu0 %v2482_v42 }
 0xc6c   :  { %2487 = vmatprep.subr.bf16.mxu0 %v2486_v44 }
 0xc6f   :  { %2489 = vmatpush3.bf16.msra.mxu0 %v2486_v44 }
 0xc70   :  { %2491 = vmatprep.subr.bf16.mxu0 %v2490_v47 }
 0xc73   :  { %2493 = vmatpush3.bf16.msra.mxu0 %v2490_v47 }
 0xc74   :  { %2495 = vmatprep.subr.bf16.mxu0 %v2494_v27 }
 0xc77   :  { %2497 = vmatpush3.bf16.msra.mxu0 %v2494_v27 }
 0xd2d   :  { %v2331_v50 = vpop.f32.mrb[2].mxu0 }
 0xd2e   :  { %v2498_v53 = vadd.f32 %v2331_v50, %v2733_v51  ;;  %v1774_v54 = vpop.f32.mrb[3].mxu0 }
 0xd2f   :  { %v2499_v34 = vadd.f32 %v1774_v54, %v2735_v52 }
 0xd30   :  { %v1790_v55 = vadd.f32 %v2498_v53, %v1788_v49 }
 0xd31   :  { %v1789_v56 = vadd.f32 %v2499_v34, %v1788_v49 }
 0xd32   :  { %v1792_v57 = vadd.f32 %v1790_v55, %v2637_v25 }
 0xd33   :  { %v1791_v58 = vadd.f32 %v1789_v56, %v2631_v9 }
 0xd35   :  { %v1793_v59 = vadd.f32 %v1792_v57, %v1791_v58 }
 0xd37   :  { %v1794_v60 = vrot.slane %v1793_v59, 4 }
 0xd39   :  { %v1795_v61 = vadd.f32 %v1794_v60, %v1793_v59 }
 0xd3b   :  { %v1796_v35 = vrot.slane %v1795_v61, 2 }
 0xd3d   :  { %v1797_v62 = vadd.f32 %v1796_v35, %v1795_v61 }
 0xd3f   :  { %v1798_v63 = vrot.slane %v1797_v62, 1 }
 0xd41   :  { %v1799_v0 = vadd.f32 %v1798_v63, %v1797_v62 }
 0xd43   :  { %v1801_v1 = vmul.f32 0.0625, %v1799_v0 }
 0xd45   :  { %v1802_v2 = vsub.f32 %v1791_v58, %v1801_v1  ;;  %v1803_v3 = vsub.f32 %v1792_v57, %v1801_v1 }
 0xd47   :  { %v1804_v51 = vmul.f32 %v1802_v2, %v1802_v2  ;;  %v1805_v4 = vmul.f32 %v1803_v3, %v1803_v3 }
 0xd49   :  { %v1806_v5 = vadd.f32 %v1805_v4, %v1804_v51  ;;  %v2050_v51 = vsub.s32 6, %v2641_v28  ;;  %v2056_v4 = vsub.s32 7, %v2641_v28 }
 0xd4b   :  { %v1807_v52 = vrot.slane %v1806_v5, 4 }
 0xd4d   :  { %v1808_v6 = vadd.f32 %v1807_v52, %v1806_v5  ;;  %v2051_v5 = vrot.slane %v2649_v30, %v2050_v51 }
 0xd4f   :  { %v1809_v7 = vrot.slane %v1808_v6, 2 }
 0xd51   :  { %v1810_v8 = vadd.f32 %v1809_v7, %v1808_v6 }
 0xd53   :  { %v1811_v25 = vrot.slane %v1810_v8, 1 }
 0xd55   :  { %v1812_v10 = vadd.f32 %v1811_v25, %v1810_v8  ;;  %v2057_v8 = vrot.slane %v2649_v30, %v2056_v4 }
 0xd57   :  { %v1813_v9 = vmul.f32 0.0625, %v1812_v10 }
 0xd59   :  { %v1814_v11 = vadd.f32 1e-05, %v1813_v9 }
 0xd5b   :  { %2552 = vrsqrt.f32 %v1814_v11 }
 0xd65   :  { %v2553_v15 = vpop.eup %2552 }
 0xd66   :  { %v1816_v16 = vmul.f32 %v2553_v15, %v1802_v2  ;;  %v1817_v18 = vmul.f32 %v2553_v15, %v1803_v3 }
 0xd68   :  { %v1822_v19 = vmul.f32 %v1821_v14, %v1816_v16  ;;  %v1823_v20 = vmul.f32 %v1821_v14, %v1817_v18 }
 0xd6a   :  { %v1828_v21 = vadd.f32 %v1827_v17, %v1822_v19  ;;  %v1829_v22 = vadd.f32 %v1827_v17, %v1823_v20 }
 0xd6c   :  { %2364 = vmatprep.mubr.f32.mxu1 %v1828_v21 }
 0xd6d   :  { %2365 = vmatmul.mubr.f32.vlgmr.msra.gmra.mrb[28].mxu1 %v1829_v22 }
 0xe40   :  { %v2366_v32 = vpop.f32.mrb[28].mxu1 }
 0xe41   :  { %v1922_v33 = vadd.f32 %v2366_v32, %v1849_v31  ;;  %v1916_v36 = vpop.f32.mrb[29].mxu1 }
 0xe42   :  { %v1917_v37 = vadd.f32 %v1916_v36, %v1849_v31 }
 0xe43   :  { %v1926_v39 = vmax.f32 %v1922_v33, 0.0 }
 0xe44   :  { %v1925_v38 = vmax.f32 %v1917_v37, 0.0 }
 0xe46   :  { %2399 = vmatprep.mubr.f32.mxu0 %v1925_v38 }
 0xe47   :  { %2400 = vmatmul.mubr.f32.vlgmr.msra.gmra.mrb[10].mxu0 %v1926_v39 }
 0xf1a   :  { %v2401_v42 = vpop.f32.mrb[10].mxu0 }
 0xf1b   :  { %v2019_v43 = vadd.f32 %v2401_v42, %v1946_v41  ;;  %v2013_v26 = vpop.f32.mrb[11].mxu0 }
 0xf1c   :  { %v2014_v44 = vadd.f32 %v2013_v26, %v1946_v41 }
 0xf1d   :  { %v2023_v45 = vadd.f32 %v2019_v43, %v1829_v22 }
 0xf1e   :  { %v2022_v46 = vadd.f32 %v2014_v44, %v1828_v21 }
 0xf20   :  { %v2024_v47 = vadd.f32 %v2023_v45, %v2022_v46 }
 0xf22   :  { %v2025_v48 = vrot.slane %v2024_v47, 4 }
 0xf24   :  { %v2026_v49 = vadd.f32 %v2025_v48, %v2024_v47 }
 0xf26   :  { %v2027_v50 = vrot.slane %v2026_v49, 2 }
 0xf28   :  { %v2028_v53 = vadd.f32 %v2027_v50, %v2026_v49 }
 0xf2a   :  { %v2029_v54 = vrot.slane %v2028_v53, 1 }
 0xf2c   :  { %v2030_v34 = vadd.f32 %v2029_v54, %v2028_v53 }
 0xf2e   :  { %v2031_v55 = vmul.f32 0.0625, %v2030_v34 }
 0xf30   :  { %v2032_v56 = vsub.f32 %v2022_v46, %v2031_v55  ;;  %v2033_v57 = vsub.f32 %v2023_v45, %v2031_v55 }
 0xf32   :  { %v2034_v58 = vmul.f32 %v2032_v56, %v2032_v56  ;;  %v2035_v59 = vmul.f32 %v2033_v57, %v2033_v57 }
 0xf34   :  { %v2036_v60 = vadd.f32 %v2035_v59, %v2034_v58 }
 0xf36   :  { %v2037_v61 = vrot.slane %v2036_v60, 4 }
 0xf38   :  { %v2038_v35 = vadd.f32 %v2037_v61, %v2036_v60 }
 0xf3a   :  { %v2039_v62 = vrot.slane %v2038_v35, 2 }
 0xf3c   :  { %v2040_v63 = vadd.f32 %v2039_v62, %v2038_v35 }
 0xf3e   :  { %v2041_v0 = vrot.slane %v2040_v63, 1 }
 0xf40   :  { %v2042_v1 = vadd.f32 %v2041_v0, %v2040_v63 }
 0xf42   :  { %v2043_v2 = vmul.f32 0.0625, %v2042_v1 }
 0xf44   :  { %v2044_v3 = vadd.f32 1e-05, %v2043_v2 }
 0xf46   :  { %2554 = vrsqrt.f32 %v2044_v3 }
 0xf50   :  { %v2555_v52 = vpop.eup %2554 }
 0xf51   :  { %v2046_v6 = vmul.f32 %v2555_v52, %v2032_v56  ;;  %v2047_v7 = vmul.f32 %v2555_v52, %v2033_v57 }
 0xf53   :  { %v2052_v25 = vmul.f32 %v2051_v5, %v2046_v6  ;;  %v2053_v10 = vmul.f32 %v2051_v5, %v2047_v7 }
 0xf55   :  { %v2058_v9 = vadd.f32 %v2057_v8, %v2052_v25  ;;  %v2059_v11 = vadd.f32 %v2057_v8, %v2053_v10 }
 0xf57   :  { %2060 = vst [vmem:[%s2804_s3] sm:$0xff] %v2058_v9  ;;  %2061 = vst [vmem:[%s2804_s3 + $0x8] sm:$0xff] %v2059_v11 }
 0xf58   :  { %2066 = vsyncpa [#allocation3], 1 }

</bundles_post_ra>
